<compile_context>
chip_gen: v7x
topology: tpu7x:2x2x1
jax: 0.10.0
libtpu: 0.0.40
codegen_flags: <defaults>
</compile_context>

<pallas_src>
import functools

import jax
import jax.numpy as jnp
from jax.experimental import pallas as pl
from jax.experimental.pallas import tpu as pltpu


NEG_INF = -1e30  # finite "-inf" used for masked scores


# ------------------------------- Pallas kernel ------------------------------- #

def _mha_kernel(q_ref, k_ref, v_ref, bias_ref, w_ref, b_ref,
                out_ref, attn_ref, *, num_heads):
    """One batch block of multi-head attention.

    q_ref    : (Bt, Sq, E)      bf16 query input
    k_ref    : (Bt, Sk, E)      bf16 key input
    v_ref    : (Bt, Sk, E)      bf16 value input
    bias_ref : (Bt, Sq, Sk)     f32 additive mask bias (0 = attend, -1e30 = masked)
    w_ref    : (4, E, E)        bf16  [Wq^T * scale, Wk^T, Wv^T, Wo^T]
    b_ref    : (4, 1, E)        f32   [bq * scale, bk, bv, bo]
    out_ref  : (Bt, Sq, E)      f32
    attn_ref : (Bt, H, Sq, Sk)  f32
    """
    Bt, Sq, E = q_ref.shape
    Sk = k_ref.shape[1]
    H = num_heads
    hd = E // H
    f32 = jnp.float32
    bf16 = jnp.bfloat16

    # ---- input projections: (Bt*S, E) @ (E, E) on the MXU, f32 accumulation ---- #
    def proj(x_ref, idx, S):
        x2 = x_ref[...].reshape(Bt * S, E)
        y = jnp.dot(x2, w_ref[idx], preferred_element_type=f32) + b_ref[idx]
        return y.astype(bf16)

    q2 = proj(q_ref, 0, Sq)      # (Bt*Sq, E); 1/sqrt(d_k) already folded into Wq/bq
    k2 = proj(k_ref, 1, Sk)      # (Bt*Sk, E)
    v2 = proj(v_ref, 2, Sk)      # (Bt*Sk, E)

    # ---- head split: (Bt*S, E) -> (Bt*H, S, hd); all heads feed ONE batched matmul ---- #
    def split_heads(x2, S):
        x3 = x2.reshape(Bt, S, E)
        parts = [x3[:, :, h * hd:(h + 1) * hd] for h in range(H)]   # static minor slices
        x4 = jnp.stack(parts, axis=1)                               # (Bt, H, S, hd)
        return x4.reshape(Bt * H, S, hd)

    qh = split_heads(q2, Sq)
    kh = split_heads(k2, Sk)
    vh = split_heads(v2, Sk)

    # ---- attention scores for all (batch, head) pairs in one batched contraction ---- #
    s = jnp.einsum("nqd,nkd->nqk", qh, kh, preferred_element_type=f32)  # (Bt*H, Sq, Sk)
    s4 = s.reshape(Bt, H, Sq, Sk)
    s4 = s4 + bias_ref[...][:, None, :, :]                              # broadcast over heads

    # ---- softmax in f32 (exp on EUP; approximate reciprocal instead of a VALU divide) ---- #
    m = jnp.max(s4, axis=-1, keepdims=True)
    p_un = jnp.exp(s4 - m)
    denom = jnp.sum(p_un, axis=-1, keepdims=True)
    p = p_un * pl.reciprocal(denom, approx=True)                        # (Bt, H, Sq, Sk)

    attn_ref[...] = p.astype(attn_ref.dtype)
    # TODO(synk): training-mode dropout on p (nn.Dropout) is not implemented; eval forward only.

    # ---- p @ v, batched over (batch, head) ---- #
    p3 = p.reshape(Bt * H, Sq, Sk).astype(bf16)
    o = jnp.einsum("nqk,nkd->nqd", p3, vh, preferred_element_type=f32)  # (Bt*H, Sq, hd)

    # ---- merge heads (single lane-concat) and output projection ---- #
    o4 = o.reshape(Bt, H, Sq, hd)
    merged = jnp.concatenate([o4[:, h] for h in range(H)], axis=-1)     # (Bt, Sq, E)
    o2 = merged.reshape(Bt * Sq, E).astype(bf16)
    out = jnp.dot(o2, w_ref[3], preferred_element_type=f32) + b_ref[3]
    out_ref[...] = out.reshape(Bt, Sq, E).astype(out_ref.dtype)


# --------------------------------- wrapper ----------------------------------- #

def mha_pallas(query, key, value, mask, params, num_heads, *,
               block_b=None, vmem_limit_bytes=32 * 1024 * 1024):
    """Pallas forward of MultiHeadedAttention. Returns (output, attn).

    query/key/value: (B, Sq, E) / (B, Sk, E) / (B, Sk, E)
    mask           : (B, 1, Sq, Sk) or (B, Sq, Sk) or None; nonzero = attend.
    params         : PyTorch-layout (wq, wk, wv, bq, bk, bv, wo, bo), W is (out, in).
    """
    wq, wk, wv, bq, bk, bv, wo, bo = params
    B, Sq, E = query.shape
    Sk = key.shape[1]
    assert E % num_heads == 0
    d_k = E // num_heads
    scale = 1.0 / (d_k ** 0.5)

    # Pack projections: y = x @ W^T + b -> pre-transpose; fold 1/sqrt(d_k) into the Q projection.
    w_all = jnp.stack([wq.T * scale, wk.T, wv.T, wo.T]).astype(jnp.bfloat16)          # (4, E, E)
    b_all = jnp.stack([bq * scale, bk, bv, bo]).reshape(4, 1, E).astype(jnp.float32)  # (4, 1, E)

    # Additive mask bias: 0 where attend, -1e30 where masked (computed once, host-side).
    if mask is None:
        bias3 = jnp.zeros((B, Sq, Sk), jnp.float32)
    else:
        mask3 = mask.reshape(B, Sq, Sk)
        bias3 = jnp.where(mask3 == 0, NEG_INF, 0.0).astype(jnp.float32)

    if block_b is None:
        block_b = min(B, 8)
    assert B % block_b == 0, "batch size must be divisible by block_b"
    grid = (B // block_b,)

    kernel = functools.partial(_mha_kernel, num_heads=num_heads)
    out, attn = pl.pallas_call(
        kernel,
        out_shape=(jax.ShapeDtypeStruct((B, Sq, E), jnp.float32),
                   jax.ShapeDtypeStruct((B, num_heads, Sq, Sk), jnp.float32)),
        grid=grid,
        in_specs=[
            pl.BlockSpec((block_b, Sq, E), lambda i: (i, 0, 0)),                 # query
            pl.BlockSpec((block_b, Sk, E), lambda i: (i, 0, 0)),                 # key
            pl.BlockSpec((block_b, Sk, E), lambda i: (i, 0, 0)),                 # value
            pl.BlockSpec((block_b, Sq, Sk), lambda i: (i, 0, 0)),                # mask bias
            pl.BlockSpec((4, E, E), lambda i: (0, 0, 0)),                        # packed weights
            pl.BlockSpec((4, 1, E), lambda i: (0, 0, 0)),                        # packed biases
        ],
        out_specs=(
            pl.BlockSpec((block_b, Sq, E), lambda i: (i, 0, 0)),                 # output
            pl.BlockSpec((block_b, num_heads, Sq, Sk), lambda i: (i, 0, 0, 0)),  # attention probs
        ),
        compiler_params=pltpu.CompilerParams(
            dimension_semantics=("parallel",),
            vmem_limit_bytes=vmem_limit_bytes),
    )(query.astype(jnp.bfloat16), key.astype(jnp.bfloat16),
      value.astype(jnp.bfloat16), bias3, w_all, b_all)
    return out, attn


# --------------------------- parameter construction --------------------------- #

def make_params(rng, emb_dim):
    """Synthetic params with the PyTorch nn.Linear layout: W (out, in), b (out,)."""
    keys = jax.random.split(rng, 8)
    bound = 1.0 / (emb_dim ** 0.5)

    def lin(kw, kb):
        w = jax.random.uniform(kw, (emb_dim, emb_dim), minval=-bound, maxval=bound,
                               dtype=jnp.float32)
        b = jax.random.uniform(kb, (emb_dim,), minval=-bound, maxval=bound,
                               dtype=jnp.float32)
        return w, b

    wq, bq = lin(keys[0], keys[1])
    wk, bk = lin(keys[2], keys[3])
    wv, bv = lin(keys[4], keys[5])
    wo, bo = lin(keys[6], keys[7])
    return (wq, wk, wv, bq, bk, bv, wo, bo)


# ----------------------------- pure-JAX reference ----------------------------- #

def mha_ref(query, key, value, mask, params, num_heads):
    """f32 reference mirroring MultiHeadedAttention.forward (eval mode)."""
    wq, wk, wv, bq, bk, bv, wo, bo = params
    B, Sq, E = query.shape
    Sk = key.shape[1]
    d_k = E // num_heads

    def lin(x, w, b):
        return x @ w.T + b

    def split(x):
        b_, s_, _ = x.shape
        return x.reshape(b_, s_, num_heads, d_k).transpose(0, 2, 1, 3)

    q = split(lin(query, wq, bq))
    k = split(lin(key, wk, bk))
    v = split(lin(value, wv, bv))
    scores = jnp.einsum("bhqd,bhkd->bhqk", q, k) / (d_k ** 0.5)
    if mask is not None:
        m = mask.reshape(B, 1, Sq, Sk)
        scores = jnp.where(m == 0, NEG_INF, scores)   # finite fill matches kernel; same softmax
    attn = jax.nn.softmax(scores, axis=-1)
    x = jnp.einsum("bhqk,bhkd->bhqd", attn, v)
    x = x.transpose(0, 2, 1, 3).reshape(B, Sq, E)
    return x @ wo.T + bo, attn


# ------------------------------------ main ------------------------------------ #

if __name__ == "__main__":
    B, S, E, H = 2, 8, 32, 4
    root = jax.random.PRNGKey(0)
    kq, kk, kv, kp = jax.random.split(root, 4)

    query = jax.random.normal(kq, (B, S, E), dtype=jnp.float32)
    key_in = jax.random.normal(kk, (B, S, E), dtype=jnp.float32)
    value_in = jax.random.normal(kv, (B, S, E), dtype=jnp.float32)

    # Key-padding style mask, shape (B, 1, Sq, Sk): 1 = attend, 0 = masked.
    key_valid = jnp.ones((B, S), dtype=jnp.int32).at[0, 6:].set(0)   # batch 0: last 2 keys padded
    mask = jnp.broadcast_to(key_valid[:, None, None, :], (B, 1, S, S))

    params = make_params(kp, E)

    out, attn = mha_pallas(query, key_in, value_in, mask, params, H)
    out = jax.block_until_ready(out)
    attn = jax.block_until_ready(attn)

    ref_out, ref_attn = mha_ref(query, key_in, value_in, mask, params, H)

    assert out.shape == (B, S, E) and attn.shape == (B, H, S, S)
    # bf16 MXU operands + approximate reciprocal -> compare against the f32 reference loosely.
    assert jnp.allclose(out, ref_out, atol=5e-2, rtol=5e-2)
    assert jnp.allclose(attn, ref_attn, atol=3e-2, rtol=3e-2)
    # Masked keys must receive zero attention.
    assert float(jnp.max(attn[0, :, :, 6:])) < 1e-6

    print("KERNEL_OK")
</pallas_src>

<mosaic_0001>
module attributes {stable_mosaic.version = 11 : i64} {
  func.func @_mha_kernel(%arg0: i32, %arg1: memref<2x8x32xbf16, #tpu.memory_space<vmem>>, %arg2: memref<2x8x32xbf16, #tpu.memory_space<vmem>>, %arg3: memref<2x8x32xbf16, #tpu.memory_space<vmem>>, %arg4: memref<2x8x8xf32, #tpu.memory_space<vmem>>, %arg5: memref<4x32x32xbf16, #tpu.memory_space<vmem>>, %arg6: memref<4x1x32xf32, #tpu.memory_space<vmem>>, %arg7: memref<2x8x32xf32, #tpu.memory_space<vmem>>, %arg8: memref<2x4x8x8xf32, #tpu.memory_space<vmem>>) attributes {dimension_semantics = [#tpu.dimension_semantics<parallel>], iteration_bounds = array<i64: 1>, scalar_prefetch = 0 : i64, scratch_operands = 0 : i64, tpu.core_type = #tpu.core_type<tc>, window_params = [{transform_indices = @transform_0, window_bounds = array<i64: 2, 8, 32>}, {transform_indices = @transform_1, window_bounds = array<i64: 2, 8, 32>}, {transform_indices = @transform_2, window_bounds = array<i64: 2, 8, 32>}, {transform_indices = @transform_3, window_bounds = array<i64: 2, 8, 8>}, {pipeline_mode = #tpu.pipeline_mode<synchronous>, transform_indices = @transform_4, window_bounds = array<i64: 4, 32, 32>}, {pipeline_mode = #tpu.pipeline_mode<synchronous>, transform_indices = @transform_5, window_bounds = array<i64: 4, 1, 32>}, {transform_indices = @transform_6, window_bounds = array<i64: 2, 8, 32>}, {transform_indices = @transform_7, window_bounds = array<i64: 2, 4, 8, 8>}]} {
    %c0 = arith.constant 0 : index
    %c0_0 = arith.constant 0 : index
    %c0_1 = arith.constant 0 : index
    %0 = vector.load %arg1[%c0, %c0_0, %c0_1] : memref<2x8x32xbf16, #tpu.memory_space<vmem>>, vector<2x8x32xbf16>
    %1 = vector.shape_cast %0 : vector<2x8x32xbf16> to vector<16x32xbf16>
    %c0_2 = arith.constant 0 : index
    %c0_3 = arith.constant 0 : index
    %c0_4 = arith.constant 0 : index
    %2 = vector.load %arg5[%c0_2, %c0_3, %c0_4] : memref<4x32x32xbf16, #tpu.memory_space<vmem>>, vector<1x32x32xbf16>
    %3 = vector.shape_cast %2 : vector<1x32x32xbf16> to vector<32x32xbf16>
    %cst = arith.constant dense<0.000000e+00> : vector<16x32xf32>
    %4 = tpu.matmul %1, %3, %cst {dimension_numbers = #tpu.dot_dimension_numbers<[1], [0], [0], [1], [0, 0, 1, 1], [], []>} : vector<16x32xbf16>, vector<32x32xbf16>, vector<16x32xf32> -> vector<16x32xf32>
    %c0_5 = arith.constant 0 : index
    %c0_6 = arith.constant 0 : index
    %c0_7 = arith.constant 0 : index
    %5 = vector.load %arg6[%c0_5, %c0_6, %c0_7] : memref<4x1x32xf32, #tpu.memory_space<vmem>>, vector<1x1x32xf32>
    %6 = vector.shape_cast %5 : vector<1x1x32xf32> to vector<1x32xf32>
    %7 = vector.broadcast %6 : vector<1x32xf32> to vector<16x32xf32>
    %8 = arith.addf %4, %7 : vector<16x32xf32>
    %9 = arith.truncf %8 : vector<16x32xf32> to vector<16x32xbf16>
    %c0_8 = arith.constant 0 : index
    %c0_9 = arith.constant 0 : index
    %c0_10 = arith.constant 0 : index
    %10 = vector.load %arg2[%c0_8, %c0_9, %c0_10] : memref<2x8x32xbf16, #tpu.memory_space<vmem>>, vector<2x8x32xbf16>
    %11 = vector.shape_cast %10 : vector<2x8x32xbf16> to vector<16x32xbf16>
    %c1 = arith.constant 1 : index
    %c0_11 = arith.constant 0 : index
    %c0_12 = arith.constant 0 : index
    %12 = vector.load %arg5[%c1, %c0_11, %c0_12] : memref<4x32x32xbf16, #tpu.memory_space<vmem>>, vector<1x32x32xbf16>
    %13 = vector.shape_cast %12 : vector<1x32x32xbf16> to vector<32x32xbf16>
    %cst_13 = arith.constant dense<0.000000e+00> : vector<16x32xf32>
    %14 = tpu.matmul %11, %13, %cst_13 {dimension_numbers = #tpu.dot_dimension_numbers<[1], [0], [0], [1], [0, 0, 1, 1], [], []>} : vector<16x32xbf16>, vector<32x32xbf16>, vector<16x32xf32> -> vector<16x32xf32>
    %c1_14 = arith.constant 1 : index
    %c0_15 = arith.constant 0 : index
    %c0_16 = arith.constant 0 : index
    %15 = vector.load %arg6[%c1_14, %c0_15, %c0_16] : memref<4x1x32xf32, #tpu.memory_space<vmem>>, vector<1x1x32xf32>
    %16 = vector.shape_cast %15 : vector<1x1x32xf32> to vector<1x32xf32>
    %17 = vector.broadcast %16 : vector<1x32xf32> to vector<16x32xf32>
    %18 = arith.addf %14, %17 : vector<16x32xf32>
    %19 = arith.truncf %18 : vector<16x32xf32> to vector<16x32xbf16>
    %c0_17 = arith.constant 0 : index
    %c0_18 = arith.constant 0 : index
    %c0_19 = arith.constant 0 : index
    %20 = vector.load %arg3[%c0_17, %c0_18, %c0_19] : memref<2x8x32xbf16, #tpu.memory_space<vmem>>, vector<2x8x32xbf16>
    %21 = vector.shape_cast %20 : vector<2x8x32xbf16> to vector<16x32xbf16>
    %c2 = arith.constant 2 : index
    %c0_20 = arith.constant 0 : index
    %c0_21 = arith.constant 0 : index
    %22 = vector.load %arg5[%c2, %c0_20, %c0_21] : memref<4x32x32xbf16, #tpu.memory_space<vmem>>, vector<1x32x32xbf16>
    %23 = vector.shape_cast %22 : vector<1x32x32xbf16> to vector<32x32xbf16>
    %cst_22 = arith.constant dense<0.000000e+00> : vector<16x32xf32>
    %24 = tpu.matmul %21, %23, %cst_22 {dimension_numbers = #tpu.dot_dimension_numbers<[1], [0], [0], [1], [0, 0, 1, 1], [], []>} : vector<16x32xbf16>, vector<32x32xbf16>, vector<16x32xf32> -> vector<16x32xf32>
    %c2_23 = arith.constant 2 : index
    %c0_24 = arith.constant 0 : index
    %c0_25 = arith.constant 0 : index
    %25 = vector.load %arg6[%c2_23, %c0_24, %c0_25] : memref<4x1x32xf32, #tpu.memory_space<vmem>>, vector<1x1x32xf32>
    %26 = vector.shape_cast %25 : vector<1x1x32xf32> to vector<1x32xf32>
    %27 = vector.broadcast %26 : vector<1x32xf32> to vector<16x32xf32>
    %28 = arith.addf %24, %27 : vector<16x32xf32>
    %29 = arith.truncf %28 : vector<16x32xf32> to vector<16x32xbf16>
    %30 = vector.shape_cast %9 : vector<16x32xbf16> to vector<2x8x32xbf16>
    %31 = vector.extract_strided_slice %30 {offsets = [0, 0, 0], sizes = [2, 8, 8], strides = [1, 1, 1]} : vector<2x8x32xbf16> to vector<2x8x8xbf16>
    %32 = vector.extract_strided_slice %30 {offsets = [0, 0, 8], sizes = [2, 8, 8], strides = [1, 1, 1]} : vector<2x8x32xbf16> to vector<2x8x8xbf16>
    %33 = vector.extract_strided_slice %30 {offsets = [0, 0, 16], sizes = [2, 8, 8], strides = [1, 1, 1]} : vector<2x8x32xbf16> to vector<2x8x8xbf16>
    %34 = vector.extract_strided_slice %30 {offsets = [0, 0, 24], sizes = [2, 8, 8], strides = [1, 1, 1]} : vector<2x8x32xbf16> to vector<2x8x8xbf16>
    %35 = vector.shape_cast %31 : vector<2x8x8xbf16> to vector<2x1x8x8xbf16>
    %36 = vector.shape_cast %32 : vector<2x8x8xbf16> to vector<2x1x8x8xbf16>
    %37 = vector.shape_cast %33 : vector<2x8x8xbf16> to vector<2x1x8x8xbf16>
    %38 = vector.shape_cast %34 : vector<2x8x8xbf16> to vector<2x1x8x8xbf16>
    %39 = tpu.concatenate %35, %36, %37, %38 in 1 : vector<2x1x8x8xbf16>, vector<2x1x8x8xbf16>, vector<2x1x8x8xbf16>, vector<2x1x8x8xbf16> -> vector<2x4x8x8xbf16>
    %40 = vector.shape_cast %39 : vector<2x4x8x8xbf16> to vector<8x8x8xbf16>
    %41 = vector.shape_cast %19 : vector<16x32xbf16> to vector<2x8x32xbf16>
    %42 = vector.extract_strided_slice %41 {offsets = [0, 0, 0], sizes = [2, 8, 8], strides = [1, 1, 1]} : vector<2x8x32xbf16> to vector<2x8x8xbf16>
    %43 = vector.extract_strided_slice %41 {offsets = [0, 0, 8], sizes = [2, 8, 8], strides = [1, 1, 1]} : vector<2x8x32xbf16> to vector<2x8x8xbf16>
    %44 = vector.extract_strided_slice %41 {offsets = [0, 0, 16], sizes = [2, 8, 8], strides = [1, 1, 1]} : vector<2x8x32xbf16> to vector<2x8x8xbf16>
    %45 = vector.extract_strided_slice %41 {offsets = [0, 0, 24], sizes = [2, 8, 8], strides = [1, 1, 1]} : vector<2x8x32xbf16> to vector<2x8x8xbf16>
    %46 = vector.shape_cast %42 : vector<2x8x8xbf16> to vector<2x1x8x8xbf16>
    %47 = vector.shape_cast %43 : vector<2x8x8xbf16> to vector<2x1x8x8xbf16>
    %48 = vector.shape_cast %44 : vector<2x8x8xbf16> to vector<2x1x8x8xbf16>
    %49 = vector.shape_cast %45 : vector<2x8x8xbf16> to vector<2x1x8x8xbf16>
    %50 = tpu.concatenate %46, %47, %48, %49 in 1 : vector<2x1x8x8xbf16>, vector<2x1x8x8xbf16>, vector<2x1x8x8xbf16>, vector<2x1x8x8xbf16> -> vector<2x4x8x8xbf16>
    %51 = vector.shape_cast %50 : vector<2x4x8x8xbf16> to vector<8x8x8xbf16>
    %52 = vector.shape_cast %29 : vector<16x32xbf16> to vector<2x8x32xbf16>
    %53 = vector.extract_strided_slice %52 {offsets = [0, 0, 0], sizes = [2, 8, 8], strides = [1, 1, 1]} : vector<2x8x32xbf16> to vector<2x8x8xbf16>
    %54 = vector.extract_strided_slice %52 {offsets = [0, 0, 8], sizes = [2, 8, 8], strides = [1, 1, 1]} : vector<2x8x32xbf16> to vector<2x8x8xbf16>
    %55 = vector.extract_strided_slice %52 {offsets = [0, 0, 16], sizes = [2, 8, 8], strides = [1, 1, 1]} : vector<2x8x32xbf16> to vector<2x8x8xbf16>
    %56 = vector.extract_strided_slice %52 {offsets = [0, 0, 24], sizes = [2, 8, 8], strides = [1, 1, 1]} : vector<2x8x32xbf16> to vector<2x8x8xbf16>
    %57 = vector.shape_cast %53 : vector<2x8x8xbf16> to vector<2x1x8x8xbf16>
    %58 = vector.shape_cast %54 : vector<2x8x8xbf16> to vector<2x1x8x8xbf16>
    %59 = vector.shape_cast %55 : vector<2x8x8xbf16> to vector<2x1x8x8xbf16>
    %60 = vector.shape_cast %56 : vector<2x8x8xbf16> to vector<2x1x8x8xbf16>
    %61 = tpu.concatenate %57, %58, %59, %60 in 1 : vector<2x1x8x8xbf16>, vector<2x1x8x8xbf16>, vector<2x1x8x8xbf16>, vector<2x1x8x8xbf16> -> vector<2x4x8x8xbf16>
    %62 = vector.shape_cast %61 : vector<2x4x8x8xbf16> to vector<8x8x8xbf16>
    "tpu.trace_start"() <{level = 10 : i32, message = "nqd,nkd->nqk"}> : () -> ()
    %cst_26 = arith.constant dense<0.000000e+00> : vector<8x8x8xf32>
    %63 = tpu.matmul %40, %51, %cst_26 {dimension_numbers = #tpu.dot_dimension_numbers<[2], [2], [1], [1], [0, 0, 0, 1, 1, 1], [0], [0]>} : vector<8x8x8xbf16>, vector<8x8x8xbf16>, vector<8x8x8xf32> -> vector<8x8x8xf32>
    "tpu.trace_stop"() : () -> ()
    %64 = vector.shape_cast %63 : vector<8x8x8xf32> to vector<2x4x8x8xf32>
    %c0_27 = arith.constant 0 : index
    %c0_28 = arith.constant 0 : index
    %c0_29 = arith.constant 0 : index
    %65 = vector.load %arg4[%c0_27, %c0_28, %c0_29] : memref<2x8x8xf32, #tpu.memory_space<vmem>>, vector<2x8x8xf32>
    %66 = vector.shape_cast %65 : vector<2x8x8xf32> to vector<2x1x8x8xf32>
    %67 = vector.broadcast %66 : vector<2x1x8x8xf32> to vector<2x4x8x8xf32>
    %68 = arith.addf %64, %67 : vector<2x4x8x8xf32>
    %cst_30 = arith.constant dense<0xFF800000> : vector<2x4x8xf32>
    %69 = vector.multi_reduction <maximumf>, %68, %cst_30 [3] : vector<2x4x8x8xf32> to vector<2x4x8xf32>
    %70 = vector.shape_cast %69 : vector<2x4x8xf32> to vector<2x4x8x1xf32>
    %71 = vector.broadcast %70 : vector<2x4x8x1xf32> to vector<2x4x8x8xf32>
    %72 = arith.subf %68, %71 : vector<2x4x8x8xf32>
    %73 = math.exp %72 : vector<2x4x8x8xf32>
    %cst_31 = arith.constant dense<0.000000e+00> : vector<2x4x8xf32>
    %74 = vector.multi_reduction <add>, %73, %cst_31 [3] : vector<2x4x8x8xf32> to vector<2x4x8xf32>
    %75 = vector.shape_cast %74 : vector<2x4x8xf32> to vector<2x4x8x1xf32>
    %76 = tpu.reciprocal %75 {approx = true} : vector<2x4x8x1xf32> -> vector<2x4x8x1xf32>
    %77 = vector.broadcast %76 : vector<2x4x8x1xf32> to vector<2x4x8x8xf32>
    %78 = arith.mulf %73, %77 : vector<2x4x8x8xf32>
    %c0_32 = arith.constant 0 : index
    %c0_33 = arith.constant 0 : index
    %c0_34 = arith.constant 0 : index
    %c0_35 = arith.constant 0 : index
    %79 = vector.load %arg8[%c0_32, %c0_33, %c0_34, %c0_35] : memref<2x4x8x8xf32, #tpu.memory_space<vmem>>, vector<2x4x8x8xf32>
    tpu.vector_store %arg8[%c0_32, %c0_33, %c0_34, %c0_35], %78 {strides = array<i32>} : memref<2x4x8x8xf32, #tpu.memory_space<vmem>>, vector<2x4x8x8xf32>,
    %80 = vector.shape_cast %78 : vector<2x4x8x8xf32> to vector<8x8x8xf32>
    %81 = arith.truncf %80 : vector<8x8x8xf32> to vector<8x8x8xbf16>
    "tpu.trace_start"() <{level = 10 : i32, message = "nqk,nkd->nqd"}> : () -> ()
    %cst_36 = arith.constant dense<0.000000e+00> : vector<8x8x8xf32>
    %82 = tpu.matmul %81, %62, %cst_36 {dimension_numbers = #tpu.dot_dimension_numbers<[2], [1], [1], [2], [0, 0, 0, 1, 1, 2], [0], [0]>} : vector<8x8x8xbf16>, vector<8x8x8xbf16>, vector<8x8x8xf32> -> vector<8x8x8xf32>
    "tpu.trace_stop"() : () -> ()
    %83 = vector.shape_cast %82 : vector<8x8x8xf32> to vector<2x4x8x8xf32>
    %84 = vector.extract_strided_slice %83 {offsets = [0, 0, 0, 0], sizes = [2, 1, 8, 8], strides = [1, 1, 1, 1]} : vector<2x4x8x8xf32> to vector<2x1x8x8xf32>
    %85 = vector.shape_cast %84 : vector<2x1x8x8xf32> to vector<2x8x8xf32>
    %86 = vector.extract_strided_slice %83 {offsets = [0, 1, 0, 0], sizes = [2, 1, 8, 8], strides = [1, 1, 1, 1]} : vector<2x4x8x8xf32> to vector<2x1x8x8xf32>
    %87 = vector.shape_cast %86 : vector<2x1x8x8xf32> to vector<2x8x8xf32>
    %88 = vector.extract_strided_slice %83 {offsets = [0, 2, 0, 0], sizes = [2, 1, 8, 8], strides = [1, 1, 1, 1]} : vector<2x4x8x8xf32> to vector<2x1x8x8xf32>
    %89 = vector.shape_cast %88 : vector<2x1x8x8xf32> to vector<2x8x8xf32>
    %90 = vector.extract_strided_slice %83 {offsets = [0, 3, 0, 0], sizes = [2, 1, 8, 8], strides = [1, 1, 1, 1]} : vector<2x4x8x8xf32> to vector<2x1x8x8xf32>
    %91 = vector.shape_cast %90 : vector<2x1x8x8xf32> to vector<2x8x8xf32>
    %92 = tpu.concatenate %85, %87, %89, %91 in 2 : vector<2x8x8xf32>, vector<2x8x8xf32>, vector<2x8x8xf32>, vector<2x8x8xf32> -> vector<2x8x32xf32>
    %93 = vector.shape_cast %92 : vector<2x8x32xf32> to vector<16x32xf32>
    %94 = arith.truncf %93 : vector<16x32xf32> to vector<16x32xbf16>
    %c3 = arith.constant 3 : index
    %c0_37 = arith.constant 0 : index
    %c0_38 = arith.constant 0 : index
    %95 = vector.load %arg5[%c3, %c0_37, %c0_38] : memref<4x32x32xbf16, #tpu.memory_space<vmem>>, vector<1x32x32xbf16>
    %96 = vector.shape_cast %95 : vector<1x32x32xbf16> to vector<32x32xbf16>
    %cst_39 = arith.constant dense<0.000000e+00> : vector<16x32xf32>
    %97 = tpu.matmul %94, %96, %cst_39 {dimension_numbers = #tpu.dot_dimension_numbers<[1], [0], [0], [1], [0, 0, 1, 1], [], []>} : vector<16x32xbf16>, vector<32x32xbf16>, vector<16x32xf32> -> vector<16x32xf32>
    %c3_40 = arith.constant 3 : index
    %c0_41 = arith.constant 0 : index
    %c0_42 = arith.constant 0 : index
    %98 = vector.load %arg6[%c3_40, %c0_41, %c0_42] : memref<4x1x32xf32, #tpu.memory_space<vmem>>, vector<1x1x32xf32>
    %99 = vector.shape_cast %98 : vector<1x1x32xf32> to vector<1x32xf32>
    %100 = vector.broadcast %99 : vector<1x32xf32> to vector<16x32xf32>
    %101 = arith.addf %97, %100 : vector<16x32xf32>
    %102 = vector.shape_cast %101 : vector<16x32xf32> to vector<2x8x32xf32>
    %c0_43 = arith.constant 0 : index
    %c0_44 = arith.constant 0 : index
    %c0_45 = arith.constant 0 : index
    %103 = vector.load %arg7[%c0_43, %c0_44, %c0_45] : memref<2x8x32xf32, #tpu.memory_space<vmem>>, vector<2x8x32xf32>
    tpu.vector_store %arg7[%c0_43, %c0_44, %c0_45], %102 {strides = array<i32>} : memref<2x8x32xf32, #tpu.memory_space<vmem>>, vector<2x8x32xf32>,
    return
  }
  func.func @transform_0(%arg0: i32) -> (i32, i32, i32) {
    %c0_i32 = arith.constant 0 : i32
    %c0_i32_0 = arith.constant 0 : i32
    %c0_i32_1 = arith.constant 0 : i32
    return %arg0, %c0_i32, %c0_i32_0 : i32, i32, i32
  }
  func.func @transform_1(%arg0: i32) -> (i32, i32, i32) {
    %c0_i32 = arith.constant 0 : i32
    %c0_i32_0 = arith.constant 0 : i32
    %c0_i32_1 = arith.constant 0 : i32
    return %arg0, %c0_i32, %c0_i32_0 : i32, i32, i32
  }
  func.func @transform_2(%arg0: i32) -> (i32, i32, i32) {
    %c0_i32 = arith.constant 0 : i32
    %c0_i32_0 = arith.constant 0 : i32
    %c0_i32_1 = arith.constant 0 : i32
    return %arg0, %c0_i32, %c0_i32_0 : i32, i32, i32
  }
  func.func @transform_3(%arg0: i32) -> (i32, i32, i32) {
    %c0_i32 = arith.constant 0 : i32
    %c0_i32_0 = arith.constant 0 : i32
    %c0_i32_1 = arith.constant 0 : i32
    return %arg0, %c0_i32, %c0_i32_0 : i32, i32, i32
  }
  func.func @transform_4(%arg0: i32) -> (i32, i32, i32) {
    %c0_i32 = arith.constant 0 : i32
    %c0_i32_0 = arith.constant 0 : i32
    %c0_i32_1 = arith.constant 0 : i32
    %c0_i32_2 = arith.constant 0 : i32
    return %c0_i32, %c0_i32_0, %c0_i32_1 : i32, i32, i32
  }
  func.func @transform_5(%arg0: i32) -> (i32, i32, i32) {
    %c0_i32 = arith.constant 0 : i32
    %c0_i32_0 = arith.constant 0 : i32
    %c0_i32_1 = arith.constant 0 : i32
    %c0_i32_2 = arith.constant 0 : i32
    return %c0_i32, %c0_i32_0, %c0_i32_1 : i32, i32, i32
  }
  func.func @transform_6(%arg0: i32) -> (i32, i32, i32) {
    %c0_i32 = arith.constant 0 : i32
    %c0_i32_0 = arith.constant 0 : i32
    %c0_i32_1 = arith.constant 0 : i32
    return %arg0, %c0_i32, %c0_i32_0 : i32, i32, i32
  }
  func.func @transform_7(%arg0: i32) -> (i32, i32, i32, i32) {
    %c0_i32 = arith.constant 0 : i32
    %c0_i32_0 = arith.constant 0 : i32
    %c0_i32_1 = arith.constant 0 : i32
    %c0_i32_2 = arith.constant 0 : i32
    return %arg0, %c0_i32, %c0_i32_0, %c0_i32_1 : i32, i32, i32, i32
  }
}

</mosaic_0001>

<bundles_post_ra>
// kernel: tpu_custom_call.1
= control target key start
LH: loop header
LB: loop body
LE: loop exit
PB: predicated region body
PF: predicated region fallthrough
CT: control target
= control target key end

     0   :  { %13 = vsyncpa [#allocation3], 0  ;;  %s2218_s0 = inlined_call_operand.hbm [shape: bf16[2,8,32], index: 0, kind: input, shape index: {}]   ;;  %s2219_s1 = inlined_call_operand.hbm [shape: bf16[2,8,32], index: 1, kind: input, shape index: {}]   ;;  %s2220_s2 = inlined_call_operand.hbm [shape: bf16[2,8,32], index: 2, kind: input, shape index: {}]   ;;  %s2221_s3 = inlined_call_operand.hbm [shape: f32[2,8,8], index: 3, kind: input, shape index: {}]   ;;  %s2222_s4 = inlined_call_operand.hbm [shape: bf16[4,32,32], index: 4, kind: input, shape index: {}]   ;;  %s2223_s5 = inlined_call_operand.vmem [shape: f32[4,1,32], index: 5, kind: input, shape index: {}]   ;;  %s2224_s6 = inlined_call_operand.hbm [shape: f32[2,8,32], index: 6, kind: output, shape index: {0}]   ;;  %s2225_s7 = inlined_call_operand.hbm [shape: f32[2,4,8,8], index: 7, kind: output, shape index: {1}]  }
   0x1   :  { %14 = vsyncpa [#allocation6], 0 }
   0x2   :  { %15 = vsyncpa [#allocation9], 0 }
   0x3   :  { %16 = vsyncpa [#allocation4], 0 }
   0x4   :  { %17 = vsyncpa [#allocation13], 0  ;;  %s1830_s24 = smov [#allocation5]   ;;  %s1831_s26 = smov [#allocation8]  }
   0x5   :  { %s35_s25 = sshll.u32 %s1830_s24, 4  ;;  %s59_s27 = sshll.u32 %s1831_s26, 4  ;;  %s36_s25 = int_to_ptr.vmem [resolvable:$true] %s35_s25  ;;  %s1888_s27 = int_to_ptr.vmem [resolvable:$true] %s59_s27 }
   0x6   :  { %s1666_s30 = scalar_lea.hbm %s2219_s1, 128 }
   0x7   :  { %p1667_p0 = scmp.ne.s32.totalorder %s2219_s1, %s1666_s30  ;;  %p1670_p1 = scmp.lt.u32.totalorder %s1666_s30, %s2219_s1 }
   0x9   :  { %p1672_p2 = pnand %p1670_p1, %p1667_p0 }
   0xb   :  { %1675 = shalt.err (!%p1672_p2)
}
   0xc   :  { %s1676_s12 = scalar_lea.vmem %s36_s25, 128  ;;  %p1681_p4 = scmp.lt.s32.totalorder %s36_s25, %s36_s25 }
   0xd   :  { %p1677_p3 = scmp.ne.s32.totalorder %s36_s25, %s1676_s12  ;;  %p1682_p5 = scmp.lt.s32.totalorder %s1676_s12, %s1676_s12 }
   0xf   :  { %p1683_p6 = por %p1682_p5, %p1681_p4 }
  0x11   :  { %p1684_p7 = pnand %p1683_p6, %p1677_p3 }
  0x13   :  { %1687 = shalt.err (!%p1684_p7)
}
  0x14   :  { %s1832_s13 = smov 64   ;;  %s1833_s14 = smov 4  }
  0x15   :  { %41 = dma.hbm_to_vmem [thread:$0]  %s2219_s1, 128, %s36_s25, [#allocation6], %s1832_s13, %s1832_s13, %s1833_s14  }
  0x16   :  { %s1688_s19 = scalar_lea.hbm %s2221_s3, 256 }
  0x17   :  { %p1689_p8 = scmp.ne.s32.totalorder %s2221_s3, %s1688_s19  ;;  %p1692_p9 = scmp.lt.u32.totalorder %s1688_s19, %s2221_s3 }
  0x19   :  { %p1694_p10 = pnand %p1692_p9, %p1689_p8 }
  0x1b   :  { %1697 = shalt.err (!%p1694_p10)
}
  0x1c   :  { %s1698_s24 = scalar_lea.vmem %s1888_s27, 256  ;;  %p1703_p12 = scmp.lt.s32.totalorder %s1888_s27, %s1888_s27 }
  0x1d   :  { %p1699_p11 = scmp.ne.s32.totalorder %s1888_s27, %s1698_s24  ;;  %p1704_p13 = scmp.lt.s32.totalorder %s1698_s24, %s1698_s24 }
  0x1f   :  { %p1705_p0 = por %p1704_p13, %p1703_p12 }
  0x21   :  { %p1706_p1 = pnand %p1705_p0, %p1699_p11 }
  0x23   :  { %1709 = shalt.err (!%p1706_p1)
}
  0x24   :  { %s1834_s1 = smov 128   ;;  %s1835_s25 = smov 8  }
  0x25   :  { %65 = dma.hbm_to_vmem [thread:$0]  %s2221_s3, 256, %s1888_s27, [#allocation9], %s1834_s1, %s1834_s1, %s1835_s25  }
  0x26   :  { %s1836_s29 = smov [#allocation2]   ;;  %s1837_s8 = smov [#allocation7]  }
  0x27   :  { %s23_s30 = sshll.u32 %s1836_s29, 4  ;;  %s47_s9 = sshll.u32 %s1837_s8, 4  ;;  %s24_s30 = int_to_ptr.vmem [resolvable:$true] %s23_s30  ;;  %s1925_s9 = int_to_ptr.vmem [resolvable:$true] %s47_s9 }
  0x28   :  { %s1710_s12 = scalar_lea.hbm %s2218_s0, 128 }
  0x29   :  { %p1711_p2 = scmp.ne.s32.totalorder %s2218_s0, %s1710_s12  ;;  %p1714_p3 = scmp.lt.u32.totalorder %s1710_s12, %s2218_s0 }
  0x2b   :  { %p1716_p4 = pnand %p1714_p3, %p1711_p2 }
  0x2d   :  { %1719 = shalt.err (!%p1716_p4)
}
  0x2e   :  { %s1720_s3 = scalar_lea.vmem %s24_s30, 128  ;;  %p1725_p6 = scmp.lt.s32.totalorder %s24_s30, %s24_s30 }
  0x2f   :  { %p1721_p5 = scmp.ne.s32.totalorder %s24_s30, %s1720_s3  ;;  %p1726_p7 = scmp.lt.s32.totalorder %s1720_s3, %s1720_s3 }
  0x31   :  { %p1727_p8 = por %p1726_p7, %p1725_p6 }
  0x33   :  { %p1728_p9 = pnand %p1727_p8, %p1721_p5 }
  0x35   :  { %1731 = shalt.err (!%p1728_p9)
}
  0x36   :  { %29 = dma.hbm_to_vmem [thread:$0]  %s2218_s0, 128, %s24_s30, [#allocation3], %s1832_s13, %s1832_s13, %s1833_s14  }
  0x37   :  { %s1732_s22 = scalar_lea.hbm %s2220_s2, 128 }
  0x38   :  { %p1733_p10 = scmp.ne.s32.totalorder %s2220_s2, %s1732_s22  ;;  %p1736_p11 = scmp.lt.u32.totalorder %s1732_s22, %s2220_s2 }
  0x3a   :  { %p1738_p12 = pnand %p1736_p11, %p1733_p10 }
  0x3c   :  { %1741 = shalt.err (!%p1738_p12)
}
  0x3d   :  { %s1742_s29 = scalar_lea.vmem %s1925_s9, 128  ;;  %p1747_p0 = scmp.lt.s32.totalorder %s1925_s9, %s1925_s9 }
  0x3e   :  { %p1743_p13 = scmp.ne.s32.totalorder %s1925_s9, %s1742_s29  ;;  %p1748_p1 = scmp.lt.s32.totalorder %s1742_s29, %s1742_s29 }
  0x40   :  { %p1749_p2 = por %p1748_p1, %p1747_p0 }
  0x42   :  { %p1750_p3 = pnand %p1749_p2, %p1743_p13 }
  0x44   :  { %1753 = shalt.err (!%p1750_p3)
}
  0x45   :  { %53 = dma.hbm_to_vmem [thread:$0]  %s2220_s2, 128, %s1925_s9, [#allocation6], %s1832_s13, %s1832_s13, %s1833_s14  }
  0x46   :  { %s1838_s8 = smov [#allocation10]   ;;  %s1754_s15 = scalar_lea.hbm %s2222_s4, 1024 }
  0x47   :  { %s71_s10 = sshll.u32 %s1838_s8, 4  ;;  %p1755_p4 = scmp.ne.s32.totalorder %s2222_s4, %s1754_s15  ;;  %s72_s10 = int_to_ptr.vmem [resolvable:$true] %s71_s10 }
  0x48   :  { %p1758_p5 = scmp.lt.u32.totalorder %s1754_s15, %s2222_s4 }
  0x4a   :  { %p1760_p6 = pnand %p1758_p5, %p1755_p4 }
  0x4c   :  { %1763 = shalt.err (!%p1760_p6)
}
  0x4d   :  { %s1764_s27 = scalar_lea.vmem %s72_s10, 1024  ;;  %p1769_p8 = scmp.lt.s32.totalorder %s72_s10, %s72_s10 }
  0x4e   :  { %p1765_p7 = scmp.ne.s32.totalorder %s72_s10, %s1764_s27  ;;  %p1770_p9 = scmp.lt.s32.totalorder %s1764_s27, %s1764_s27 }
  0x50   :  { %p1771_p10 = por %p1770_p9, %p1769_p8 }
  0x52   :  { %p1772_p11 = pnand %p1771_p10, %p1765_p7 }
  0x54   :  { %1775 = shalt.err (!%p1772_p11)
}
  0x55   :  { %77 = dma.hbm_to_vmem [thread:$0]  %s2222_s4, 1024, %s72_s10, [#allocation9], %s1832_s13, %s1832_s13, %s1833_s14  }
  0x56   :  { %1820 = dma.done.wait [#allocation3], 128  }
  0x57   :  { %1821 = vsyncadd [#allocation3], 4294967168 }
  0x58   :  { %1822 = dma.done.wait [#allocation6], 256  }
  0x59   :  { %1823 = vsyncadd [#allocation6], 4294967040 }
  0x5a   :  { %1824 = dma.done.wait [#allocation9], 1280  }
  0x5b   :  { %1825 = vsyncadd [#allocation9], 4294966016  ;;  %v1839_v0 = vmov 0.0   ;;  %vm1840_vm0 = vmmov 0   ;;  %v1623_v1 = vld [vmem:[#allocation10] sm:$0xff]   ;;  %v1624_v2 = vld [vmem:[#allocation10 + $0x10] sm:$0xff]  }
  0x5c   :  { %1462 = vmatprep.subr.bf16.mxu0 %v1839_v0  ;;  %1470 = vmatprep.subr.bf16.mxu1 %v1839_v0  ;;  %v1625_v3 = vld [vmem:[#allocation10 + $0x8] sm:$0xff]   ;;  %v1626_v4 = vld [vmem:[#allocation10 + $0x18] sm:$0xff]   ;;  %vm126_vm1 = vcmask 261120   ;;  %v1628_v6 = vld [vmem:[#allocation5] sm:$0xff]   ;;  %vm377_vm2 = vcmask 64512   ;;  %s1841_s20 = smov 120  }
  0x5d   :  { %1466 = vmatprep.mubr.msk.bf16.mxu0 %vm1840_vm0, %v1839_v0  ;;  %1474 = vmatprep.mubr.msk.bf16.mxu1 %vm1840_vm0, %v1839_v0  ;;  %v1627_v5 = vld [vmem:[#allocation2] sm:$0xff]   ;;  %v1629_v7 = vld [vmem:[#allocation10 + $0x20] sm:$0xff]   ;;  %v1630_v8 = vld [vmem:[#allocation10 + $0x28] sm:$0xff]   ;;  %s1842_s21 = smov 104   ;;  %s1843_s22 = smov 112   ;;  %vm863_vm3 = vcmask 1043456  }
  0x5e   :  { %1463 = vmatpush3.bf16.msra.mxu0 %v1623_v1  ;;  %1471 = vmatpush3.bf16.msra.mxu1 %v1624_v2  ;;  %v1631_v9 = vld [vmem:[#allocation7] sm:$0xff]   ;;  %v1368_v10 = vld [vmem:[%s2223_s5] ss:$0 sm:$0xff]  ;;  %v1374_v11 = vld [vmem:[%s2223_s5 + $0x1] ss:$0 sm:$0xff]  ;;  %s1844_s26 = smov 16  }
  0x5f   :  { %1464 = vmatprep.subr.bf16.mxu0 %v1839_v0  ;;  %1472 = vmatprep.subr.bf16.mxu1 %v1839_v0  ;;  %v1380_v48 = vld [vmem:[%s2223_s5 + $0x2] ss:$0 sm:$0xff]  ;;  %v746_v57 = vld [vmem:[#allocation8] sm:$0xff]  ;;  %s1845_s28 = smov 24   ;;  %vm1255_vm4 = vcmask 130048   ;;  %vm1258_vm5 = vcmask 195584  }
  0x60   :  { %s1846_s29 = smov [#allocation12]  }
  0x61   :  { %s1350_s0 = sshll.u32 %s1846_s29, 4  ;;  %s1351_s0 = int_to_ptr.vmem [resolvable:$true] %s1350_s0 }
  0x62   :  { %1465 = vmatpush3.bf16.msra.mxu0 %v1625_v3  ;;  %1473 = vmatpush3.bf16.msra.mxu1 %v1626_v4  ;;  %s1776_s30 = scalar_lea.vmem %s1351_s0, 1024  ;;  %p1781_p13 = scmp.lt.s32.totalorder %s1351_s0, %s1351_s0 }
  0x63   :  { %1478 = vmatprep.subr.bf16.mxu0 %v1839_v0  ;;  %1486 = vmatprep.subr.bf16.mxu1 %v1839_v0  ;;  %p1777_p12 = scmp.ne.s32.totalorder %s1351_s0, %s1776_s30  ;;  %p1782_p0 = scmp.lt.s32.totalorder %s1776_s30, %s1776_s30 }
  0x65   :  { %1467 = vmatmul.mubr.msk.bf16.vlgmr.msra.gmra.mrb[0].mxu0 %vm126_vm1, %v1627_v5  ;;  %1475 = vmatmul.mubr.msk.bf16.vlgmr.msra.gmra.mrb[0].mxu1 %vm126_vm1, %v1628_v6  ;;  %p1783_p1 = por %p1782_p0, %p1781_p13 }
  0x66   :  { %1482 = vmatprep.mubr.msk.bf16.mxu0 %vm1840_vm0, %v1839_v0  ;;  %1488 = vmatprep.mubr.msk.bf16.mxu1 %vm1840_vm0, %v1839_v0 }
  0x67   :  { %1479 = vmatpush3.bf16.msra.mxu0 %v1629_v7  ;;  %p1784_p2 = pnand %p1783_p1, %p1777_p12 }
  0x68   :  { %1480 = vmatprep.subr.bf16.mxu0 %v1839_v0 }
  0x6b   :  { %1481 = vmatpush3.bf16.msra.mxu0 %v1630_v8 }
  0x6c   :  { %1492 = vmatprep.subr.bf16.mxu0 %v1839_v0 }
  0x6e   :  { %1483 = vmatmul.mubr.msk.bf16.vlgmr.msra.gmra.mrb[4].mxu0 %vm126_vm1, %v1631_v9 }
  0x6f   :  { %1494 = vmatprep.mubr.msk.bf16.mxu0 %vm1840_vm0, %v1839_v0 }
 0x138   :  { %v164_v12 = vpop.f32.mrb[0].mxu0  ;;  %v241_v14 = vpop.f32.mrb[0].mxu1 }
 0x139   :  { %v165_v13 = vadd.f32 %v1368_v10, %v164_v12  ;;  %v1468_v15 = vpop.f32.mrb[1].mxu0  ;;  %v242_v16 = vadd.f32 %v1374_v11, %v241_v14  ;;  %v1476_v17 = vpop.f32.mrb[1].mxu1 }
 0x13a   :  { %v167_v18 = vpop.f32.mrb[2].mxu0  ;;  %v244_v20 = vpop.f32.mrb[2].mxu1  ;;  %v747_v17 = vld [vmem:[#allocation8 + $0x8] sm:$0xff] }
 0x13b   :  { %v1412_v19 = vpack.c.bf16 %v165_v13, %v165_v13  ;;  %v1469_v21 = vpop.f32.mrb[3].mxu0  ;;  %v1414_v22 = vpack.c.bf16 %v242_v16, %v242_v16  ;;  %v1477_v23 = vpop.f32.mrb[3].mxu1  ;;  %v245_v25 = vadd.f32 %v1374_v11, %v244_v20  ;;  %v168_v27 = vadd.f32 %v1368_v10, %v167_v18 }
 0x13d   :  { %331 = vrot.lane.b32.xlu1 %v1412_v19, %s1841_s20  ;;  %348 = vrot.lane.b32.xlu0 %v1414_v22, %s1841_s20  ;;  %v382_v24 = vsel %vm377_vm2, %v1414_v22, 0  ;;  %v1415_v26 = vpack.c.bf16 %v245_v25, %v245_v25  ;;  %v1413_v28 = vpack.c.bf16 %v168_v27, %v168_v27 }
 0x13e   :  { %1487 = vmatpush3.bf16.xpose.msra.mxu1 %v382_v24 }
 0x13f   :  { %1498 = vmatprep.subr.bf16.mxu1 %v1839_v0  ;;  %v566_v38 = vsel %vm377_vm2, %v1415_v26, 0 }
 0x141   :  { %356 = vrot.lane.b32.xlu1 %v1414_v22, %s1842_s21  ;;  %352 = vrot.lane.b32.xlu0 %v1414_v22, %s1843_s22  ;;  %v318_v49 = vpop.f32.mrb[4].mxu0 }
 0x142   :  { %v319_v50 = vadd.f32 %v1380_v48, %v318_v49  ;;  %v1484_v51 = vpop.f32.mrb[5].mxu0 }
 0x143   :  { %v321_v52 = vpop.f32.mrb[6].mxu0 }
 0x144   :  { %v2059_v53 = vadd.f32 %v1380_v48, %v321_v52  ;;  %v1485_v54 = vpop.f32.mrb[7].mxu0  ;;  %v2061_v55 = vpack.c.bf16 %v319_v50, %v319_v50 }
 0x145   :  { %339 = vrot.lane.b32.xlu1 %v1412_v19, %s1842_s21  ;;  %335 = vrot.lane.b32.xlu0 %v1412_v19, %s1843_s22 }
 0x146   :  { %1489 = vmatmul.mubr.msk.bf16.vlgmr.msra.gmra.mrb[4].mxu1 %vm377_vm2, %v1412_v19  ;;  %v865_v56 = vsel %vm863_vm3, %v2061_v55, 0 }
 0x147   :  { %1500 = vmatprep.mubr.msk.bf16.mxu1 %vm1840_vm0, %v1839_v0 }
 0x149   :  { %354 = vrot.lane.b32.xlu1 %v1415_v26, %s1843_s22  ;;  %350 = vrot.lane.b32.xlu0 %v1415_v26, %s1841_s20 }
 0x14d   :  { %358 = vrot.lane.b32.xlu1 %v1415_v26, %s1842_s21  ;;  %333 = vrot.lane.b32.xlu0 %v1413_v28, %s1841_s20 }
 0x151   :  { %341 = vrot.lane.b32.xlu1 %v1413_v28, %s1842_s21  ;;  %337 = vrot.lane.b32.xlu0 %v1413_v28, %s1843_s22 }
 0x1af   :  { %v332_v29 = vpop.permute.xlu1 %331  ;;  %v349_v30 = vpop.permute.xlu0 %348 }
 0x1b0   :  { %v428_v31 = vsel %vm377_vm2, %v349_v30, 0 }
 0x1b1   :  { %1493 = vmatpush3.bf16.xpose.msra.mxu0 %v428_v31 }
 0x1b2   :  { %1504 = vmatprep.subr.bf16.mxu0 %v1839_v0 }
 0x1b3   :  { %v353_v32 = vpop.permute.xlu0 %352  ;;  %v357_v33 = vpop.permute.xlu1 %356 }
 0x1b4   :  { %v474_v34 = vsel %vm377_vm2, %v353_v32, 0  ;;  %v520_v36 = vsel %vm377_vm2, %v357_v33, 0 }
 0x1b5   :  { %1499 = vmatpush3.bf16.xpose.msra.mxu1 %v474_v34 }
 0x1b6   :  { %1510 = vmatprep.subr.bf16.mxu1 %v1839_v0 }
 0x1b7   :  { %v336_v35 = vpop.permute.xlu0 %335  ;;  %v340_v37 = vpop.permute.xlu1 %339 }
 0x1b8   :  { %1495 = vmatmul.mubr.msk.bf16.vlgmr.msra.gmra.mrb[8].mxu0 %vm377_vm2, %v332_v29 }
 0x1b9   :  { %1505 = vmatpush3.bf16.xpose.msra.mxu0 %v520_v36  ;;  %1506 = vmatprep.mubr.msk.bf16.mxu0 %vm1840_vm0, %v1839_v0 }
 0x1ba   :  { %1516 = vmatprep.subr.bf16.mxu0 %v1839_v0 }
 0x1bb   :  { %v351_v39 = vpop.permute.xlu0 %350  ;;  %v355_v40 = vpop.permute.xlu1 %354 }
 0x1bc   :  { %1501 = vmatmul.mubr.msk.bf16.vlgmr.msra.gmra.mrb[8].mxu1 %vm377_vm2, %v336_v35  ;;  %v612_v41 = vsel %vm377_vm2, %v351_v39, 0  ;;  %v658_v42 = vsel %vm377_vm2, %v355_v40, 0 }
 0x1bd   :  { %1511 = vmatpush3.bf16.xpose.msra.mxu1 %v566_v38  ;;  %1512 = vmatprep.mubr.msk.bf16.mxu1 %vm1840_vm0, %v1839_v0 }
 0x1be   :  { %1522 = vmatprep.subr.bf16.mxu1 %v1839_v0 }
 0x1bf   :  { %v359_v43 = vpop.permute.xlu1 %358  ;;  %v334_v44 = vpop.permute.xlu0 %333 }
 0x1c0   :  { %1507 = vmatmul.mubr.msk.bf16.vlgmr.msra.gmra.mrb[12].mxu0 %vm377_vm2, %v340_v37  ;;  %v704_v45 = vsel %vm377_vm2, %v359_v43, 0 }
 0x1c1   :  { %1517 = vmatpush3.bf16.xpose.msra.mxu0 %v612_v41  ;;  %1518 = vmatprep.mubr.msk.bf16.mxu0 %vm1840_vm0, %v1839_v0 }
 0x1c2   :  { %1528 = vmatprep.subr.bf16.mxu0 %v1839_v0 }
 0x1c3   :  { %v338_v46 = vpop.permute.xlu0 %337  ;;  %v342_v47 = vpop.permute.xlu1 %341 }
 0x1c4   :  { %1513 = vmatmul.mubr.msk.bf16.vlgmr.msra.gmra.mrb[12].mxu1 %vm377_vm2, %v1413_v28 }
 0x1c5   :  { %1523 = vmatpush3.bf16.xpose.msra.mxu1 %v658_v42  ;;  %1524 = vmatprep.mubr.msk.bf16.mxu1 %vm1840_vm0, %v1839_v0 }
 0x1c6   :  { %1534 = vmatprep.subr.bf16.mxu1 %v1839_v0 }
 0x1c8   :  { %1519 = vmatmul.mubr.msk.bf16.vlgmr.msra.gmra.mrb[16].mxu0 %vm377_vm2, %v334_v44 }
 0x1c9   :  { %1529 = vmatpush3.bf16.xpose.msra.mxu0 %v704_v45  ;;  %1530 = vmatprep.mubr.msk.bf16.mxu0 %vm1840_vm0, %v1839_v0 }
 0x1ca   :  { %1540 = vmatprep.subr.bf16.mxu0 %v1839_v0 }
 0x1cc   :  { %1525 = vmatmul.mubr.msk.bf16.vlgmr.msra.gmra.mrb[16].mxu1 %vm377_vm2, %v338_v46 }
 0x1cd   :  { %1536 = vmatprep.mubr.msk.bf16.mxu1 %vm1840_vm0, %v1839_v0  ;;  %1535 = vmatpush3.bf16.msra.mxu1 %v865_v56 }
 0x1ce   :  { %1546 = vmatprep.subr.bf16.mxu1 %v1839_v0 }
 0x1d0   :  { %1531 = vmatmul.mubr.msk.bf16.vlgmr.msra.gmra.mrb[20].mxu0 %vm377_vm2, %v342_v47 }
 0x1d1   :  { %1542 = vmatprep.mubr.msk.bf16.mxu0 %vm1840_vm0, %v1839_v0 }
 0x219   :  { %v418_v58 = vpop.f32.mrb[4].mxu1 }
 0x21a   :  { %v748_v59 = vadd.f32 %v746_v57, %v418_v58  ;;  %v1490_v60 = vpop.f32.mrb[5].mxu1 }
 0x21b   :  { %v421_v61 = vpop.f32.mrb[6].mxu1 }
 0x21c   :  { %v1491_v62 = vpop.f32.mrb[7].mxu1  ;;  %v756_v63 = vsel %vm377_vm2, %v748_v59, -inf }
 0x21d   :  { %757 = vmax.xlane.f32.xlu0 %v756_v63 }
 0x28b   :  { %v464_v1 = vpop.f32.mrb[8].mxu0 }
 0x28c   :  { %v749_v2 = vadd.f32 %v746_v57, %v464_v1  ;;  %v1496_v3 = vpop.f32.mrb[9].mxu0 }
 0x28d   :  { %v467_v4 = vpop.f32.mrb[10].mxu0 }
 0x28e   :  { %v1497_v5 = vpop.f32.mrb[11].mxu0  ;;  %v759_v6 = vsel %vm377_vm2, %v749_v2, -inf }
 0x28f   :  { %v510_v7 = vpop.f32.mrb[8].mxu1  ;;  %760 = vmax.xlane.f32.xlu1 %v759_v6 }
 0x290   :  { %v750_v8 = vadd.f32 %v746_v57, %v510_v7  ;;  %v1502_v9 = vpop.f32.mrb[9].mxu1  ;;  %v2101_v7 = vpack.c.bf16 %v2059_v53, %v2059_v53 }
 0x291   :  { %v513_v10 = vpop.f32.mrb[10].mxu1 }
 0x292   :  { %v1503_v11 = vpop.f32.mrb[11].mxu1  ;;  %v762_v12 = vsel %vm377_vm2, %v750_v8, -inf }
 0x293   :  { %763 = vmax.xlane.f32.xlu0 %v762_v12  ;;  %v556_v13 = vpop.f32.mrb[12].mxu0 }
 0x294   :  { %v751_v14 = vadd.f32 %v746_v57, %v556_v13  ;;  %v1508_v15 = vpop.f32.mrb[13].mxu0 }
 0x295   :  { %v559_v16 = vpop.f32.mrb[14].mxu0 }
 0x296   :  { %v1509_v18 = vpop.f32.mrb[15].mxu0  ;;  %v765_v19 = vsel %vm377_vm2, %v751_v14, -inf }
 0x297   :  { %v602_v20 = vpop.f32.mrb[12].mxu1  ;;  %766 = vmax.xlane.f32.xlu0 %v765_v19 }
 0x298   :  { %v2070_v21 = vadd.f32 %v747_v17, %v602_v20  ;;  %v1514_v22 = vpop.f32.mrb[13].mxu1 }
 0x299   :  { %v605_v23 = vpop.f32.mrb[14].mxu1 }
 0x29a   :  { %v1515_v24 = vpop.f32.mrb[15].mxu1  ;;  %v768_v25 = vsel %vm377_vm2, %v2070_v21, -inf }
 0x29b   :  { %769 = vmax.xlane.f32.xlu1 %v768_v25  ;;  %v648_v26 = vpop.f32.mrb[16].mxu0 }
 0x29c   :  { %v2074_v27 = vadd.f32 %v747_v17, %v648_v26  ;;  %v1520_v28 = vpop.f32.mrb[17].mxu0 }
 0x29d   :  { %v651_v29 = vpop.f32.mrb[18].mxu0 }
 0x29e   :  { %v1521_v30 = vpop.f32.mrb[19].mxu0  ;;  %v771_v31 = vsel %vm377_vm2, %v2074_v27, -inf }
 0x29f   :  { %v694_v32 = vpop.f32.mrb[16].mxu1  ;;  %772 = vmax.xlane.f32.xlu0 %v771_v31 }
 0x2a0   :  { %v754_v33 = vadd.f32 %v747_v17, %v694_v32  ;;  %v1526_v34 = vpop.f32.mrb[17].mxu1 }
 0x2a1   :  { %v697_v35 = vpop.f32.mrb[18].mxu1 }
 0x2a2   :  { %v1527_v36 = vpop.f32.mrb[19].mxu1  ;;  %v774_v37 = vsel %vm377_vm2, %v754_v33, -inf }
 0x2a3   :  { %775 = vmax.xlane.f32.xlu1 %v774_v37  ;;  %v740_v38 = vpop.f32.mrb[20].mxu0 }
 0x2a4   :  { %v755_v39 = vadd.f32 %v747_v17, %v740_v38  ;;  %v1532_v40 = vpop.f32.mrb[21].mxu0 }
 0x2a5   :  { %v743_v41 = vpop.f32.mrb[22].mxu0 }
 0x2a6   :  { %v1533_v42 = vpop.f32.mrb[23].mxu0  ;;  %v777_v43 = vsel %vm377_vm2, %v755_v39, -inf }
 0x2a7   :  { %778 = vmax.xlane.f32.xlu0 %v777_v43  ;;  %v1049_v43 = vsel %vm863_vm3, %v2101_v7, 0 }
 0x2aa   :  { %v758_v44 = vpop.xlane.xlu0 %757 }
 0x2ab   :  { %v780_v45 = vsub.f32 %v748_v59, %v758_v44 }
 0x2ad   :  { %v788_v46 = vmul.f32 1.442695, %v780_v45 }
 0x2af   :  { %1634 = vpow2.f32 %v788_v46 }
 0x2b4   :  { %365 = vrot.lane.b32.xlu1 %v2061_v55, %s1841_s20 }
 0x2b9   :  { %v2082_v47 = vpop.eup %1634 }
 0x2ba   :  { %v804_v48 = vsel %vm377_vm2, %v2082_v47, 0.0 }
 0x2d8   :  { %805 = vadd.xlane.f32.xlu1 %v804_v48 }
 0x31c   :  { %v761_v49 = vpop.xlane.xlu1 %760 }
 0x31d   :  { %v781_v50 = vsub.f32 %v749_v2, %v761_v49 }
 0x31f   :  { %v790_v51 = vmul.f32 1.442695, %v781_v50 }
 0x320   :  { %v764_v52 = vpop.xlane.xlu0 %763 }
 0x321   :  { %1636 = vpow2.f32 %v790_v51  ;;  %v782_v54 = vsub.f32 %v750_v8, %v764_v52 }
 0x323   :  { %v792_v56 = vmul.f32 1.442695, %v782_v54 }
 0x324   :  { %v767_v57 = vpop.xlane.xlu0 %766 }
 0x325   :  { %1638 = vpow2.f32 %v792_v56  ;;  %v783_v58 = vsub.f32 %v751_v14, %v767_v57 }
 0x327   :  { %v794_v60 = vmul.f32 1.442695, %v783_v58 }
 0x328   :  { %v770_v61 = vpop.xlane.xlu1 %769 }
 0x329   :  { %1640 = vpow2.f32 %v794_v60  ;;  %v784_v9 = vsub.f32 %v2070_v21, %v770_v61 }
 0x32b   :  { %v1637_v59 = vpop.eup %1636  ;;  %v796_v12 = vmul.f32 1.442695, %v784_v9 }
 0x32c   :  { %v807_v62 = vsel %vm377_vm2, %v1637_v59, 0.0  ;;  %v773_v8 = vpop.xlane.xlu0 %772 }
 0x32d   :  { %808 = vadd.xlane.f32.xlu0 %v807_v62  ;;  %v785_v10 = vsub.f32 %v2074_v27, %v773_v8  ;;  %1642 = vpow2.f32 %v796_v12 }
 0x32f   :  { %v2087_v63 = vpop.eup %1638  ;;  %v798_v14 = vmul.f32 1.442695, %v785_v10 }
 0x330   :  { %v776_v1 = vpop.xlane.xlu1 %775  ;;  %v810_v2 = vsel %vm377_vm2, %v2087_v63, 0.0 }
 0x331   :  { %811 = vadd.xlane.f32.xlu1 %v810_v2  ;;  %v786_v13 = vsub.f32 %v754_v33, %v776_v1  ;;  %1644 = vpow2.f32 %v798_v14 }
 0x333   :  { %v2091_v3 = vpop.eup %1640  ;;  %v800_v16 = vmul.f32 1.442695, %v786_v13 }
 0x334   :  { %v366_v4 = vpop.permute.xlu1 %365  ;;  %v813_v5 = vsel %vm377_vm2, %v2091_v3, 0.0  ;;  %v779_v11 = vpop.xlane.xlu0 %778 }
 0x335   :  { %v911_v6 = vsel %vm863_vm3, %v366_v4, 0  ;;  %814 = vadd.xlane.f32.xlu0 %v813_v5  ;;  %v787_v15 = vsub.f32 %v755_v39, %v779_v11  ;;  %1646 = vpow2.f32 %v800_v16 }
 0x336   :  { %1541 = vmatpush3.bf16.msra.mxu0 %v911_v6 }
 0x337   :  { %1552 = vmatprep.subr.bf16.mxu0 %v1839_v0  ;;  %v802_v53 = vmul.f32 1.442695, %v787_v15  ;;  %v2109_v17 = vpop.eup %1642 }
 0x338   :  { %v816_v20 = vsel %vm377_vm2, %v2109_v17, 0.0 }
 0x339   :  { %1648 = vpow2.f32 %v802_v53 }
 0x342   :  { %373 = vrot.lane.b32.xlu1 %v2061_v55, %s1842_s21 }
 0x346   :  { %367 = vrot.lane.b32.xlu1 %v2101_v7, %s1841_s20 }
 0x34b   :  { %369 = vrot.lane.b32.xlu0 %v2061_v55, %s1843_s22  ;;  %v2111_v55 = vpop.eup %1644 }
 0x34c   :  { %v2113_v19 = vpop.eup %1646  ;;  %v819_v21 = vsel %vm377_vm2, %v2111_v55, 0.0 }
 0x34d   :  { %v2119_v22 = vpop.eup %1648  ;;  %v822_v23 = vsel %vm377_vm2, %v2113_v19, 0.0 }
 0x34e   :  { %v825_v24 = vsel %vm377_vm2, %v2119_v22, 0.0 }
 0x365   :  { %v806_v18 = vpop.xlane.xlu1 %805 }
 0x366   :  { %1650 = vrcp.f32 %v806_v18 }
 0x36a   :  { %817 = vadd.xlane.f32.xlu1 %v816_v20  ;;  %820 = vadd.xlane.f32.xlu0 %v819_v21  ;;  %v1632_v20 = vld [vmem:[#allocation10 + $0x30] sm:$0xff]  }
 0x36e   :  { %823 = vadd.xlane.f32.xlu1 %v822_v23  ;;  %826 = vadd.xlane.f32.xlu0 %v825_v24  ;;  %v1633_v24 = vld [vmem:[#allocation10 + $0x38] sm:$0xff]  }
 0x370   :  { %v1651_v25 = vpop.eup %1650 }
 0x371   :  { %v836_v26 = vmul.f32 %v1651_v25, %v2082_v47 }
 0x373   :  { %844 = vst.msk [vmem:[#allocation12] sm:$0xff] %vm377_vm2, %v836_v26  ;;  %v852_v27 = vpack.c.bf16 %v836_v26, %v836_v26 }
 0x375   :  { %1537 = vmatmul.mubr.msk.bf16.vlgmr.msra.gmra.mrb[20].mxu1 %vm377_vm2, %v852_v27 }
 0x376   :  { %1548 = vmatprep.mubr.msk.bf16.mxu1 %vm1840_vm0, %v1839_v0 }
 0x37f   :  { %375 = vrot.lane.b32.xlu1 %v2101_v7, %s1842_s21 }
 0x384   :  { %371 = vrot.lane.b32.xlu0 %v2101_v7, %s1843_s22 }
 0x3ba   :  { %v809_v28 = vpop.xlane.xlu0 %808 }
 0x3bb   :  { %1652 = vrcp.f32 %v809_v28 }
 0x3be   :  { %v812_v29 = vpop.xlane.xlu1 %811 }
 0x3bf   :  { %1654 = vrcp.f32 %v812_v29 }
 0x3c2   :  { %v815_v30 = vpop.xlane.xlu0 %814  ;;  %v374_v34 = vpop.permute.xlu1 %373 }
 0x3c3   :  { %1656 = vrcp.f32 %v815_v30  ;;  %v1003_v39 = vsel %vm863_vm3, %v374_v34, 0 }
 0x3c5   :  { %v1653_v31 = vpop.eup %1652 }
 0x3c6   :  { %v837_v32 = vmul.f32 %v1653_v31, %v1637_v59  ;;  %v370_v33 = vpop.permute.xlu0 %369  ;;  %v368_v44 = vpop.permute.xlu1 %367 }
 0x3c7   :  { %v957_v35 = vsel %vm863_vm3, %v370_v33, 0  ;;  %v1095_v46 = vsel %vm863_vm3, %v368_v44, 0 }
 0x3c8   :  { %845 = vst.msk [vmem:[#allocation12 + $0x8] sm:$0xff] %vm377_vm2, %v837_v32  ;;  %1547 = vmatpush3.bf16.msra.mxu1 %v957_v35  ;;  %v853_v36 = vpack.c.bf16 %v837_v32, %v837_v32 }
 0x3c9   :  { %v1655_v37 = vpop.eup %1654  ;;  %1558 = vmatprep.subr.bf16.mxu1 %v1839_v0 }
 0x3ca   :  { %v838_v38 = vmul.f32 %v1655_v37, %v2087_v63  ;;  %1543 = vmatmul.mubr.msk.bf16.vlgmr.msra.gmra.mrb[24].mxu0 %vm377_vm2, %v853_v36 }
 0x3cb   :  { %1553 = vmatpush3.bf16.msra.mxu0 %v1003_v39  ;;  %1554 = vmatprep.mubr.msk.bf16.mxu0 %vm1840_vm0, %v1839_v0 }
 0x3cc   :  { %846 = vst.msk [vmem:[#allocation12 + $0x10] sm:$0xff] %vm377_vm2, %v838_v38  ;;  %v854_v40 = vpack.c.bf16 %v838_v38, %v838_v38  ;;  %1564 = vmatprep.subr.bf16.mxu0 %v1839_v0 }
 0x3cd   :  { %v1657_v41 = vpop.eup %1656 }
 0x3ce   :  { %v839_v42 = vmul.f32 %v1657_v41, %v2091_v3  ;;  %1549 = vmatmul.mubr.msk.bf16.vlgmr.msra.gmra.mrb[24].mxu1 %vm377_vm2, %v854_v40 }
 0x3cf   :  { %1559 = vmatpush3.bf16.msra.mxu1 %v1049_v43  ;;  %1560 = vmatprep.mubr.msk.bf16.mxu1 %vm1840_vm0, %v1839_v0 }
 0x3d0   :  { %847 = vst.msk [vmem:[#allocation12 + $0x18] sm:$0xff] %vm377_vm2, %v839_v42  ;;  %v855_v45 = vpack.c.bf16 %v839_v42, %v839_v42  ;;  %1570 = vmatprep.subr.bf16.mxu1 %v1839_v0 }
 0x3d2   :  { %1555 = vmatmul.mubr.msk.bf16.vlgmr.msra.gmra.mrb[28].mxu0 %vm377_vm2, %v855_v45 }
 0x3d3   :  { %1565 = vmatpush3.bf16.msra.mxu0 %v1095_v46  ;;  %1566 = vmatprep.mubr.msk.bf16.mxu0 %vm1840_vm0, %v1839_v0 }
 0x3d4   :  { %1576 = vmatprep.subr.bf16.mxu0 %v1839_v0 }
 0x3f7   :  { %v818_v47 = vpop.xlane.xlu1 %817  ;;  %v821_v48 = vpop.xlane.xlu0 %820 }
 0x3f8   :  { %1658 = vrcp.f32 %v818_v47 }
 0x3f9   :  { %1660 = vrcp.f32 %v821_v48 }
 0x3fb   :  { %v824_v49 = vpop.xlane.xlu1 %823  ;;  %v827_v50 = vpop.xlane.xlu0 %826 }
 0x3fc   :  { %1662 = vrcp.f32 %v824_v49 }
 0x3fd   :  { %1664 = vrcp.f32 %v827_v50 }
 0x3ff   :  { %v372_v57 = vpop.permute.xlu0 %371  ;;  %v376_v58 = vpop.permute.xlu1 %375 }
 0x400   :  { %v1141_v1 = vsel %vm863_vm3, %v372_v57, 0  ;;  %v1187_v3 = vsel %vm863_vm3, %v376_v58, 0 }
 0x402   :  { %v1659_v51 = vpop.eup %1658 }
 0x403   :  { %v1661_v52 = vpop.eup %1660  ;;  %v840_v54 = vmul.f32 %v1659_v51, %v2109_v17 }
 0x404   :  { %v841_v56 = vmul.f32 %v1661_v52, %v2111_v55 }
 0x405   :  { %848 = vst.msk [vmem:[#allocation12 + $0x20] sm:$0xff] %vm377_vm2, %v840_v54  ;;  %v856_v60 = vpack.c.bf16 %v840_v54, %v840_v54 }
 0x406   :  { %v1663_v59 = vpop.eup %1662  ;;  %849 = vst.msk [vmem:[#allocation12 + $0x28] sm:$0xff] %vm377_vm2, %v841_v56  ;;  %v857_v61 = vpack.c.bf16 %v841_v56, %v841_v56 }
 0x407   :  { %v1665_v62 = vpop.eup %1664  ;;  %v842_v63 = vmul.f32 %v1663_v59, %v2113_v19  ;;  %1561 = vmatmul.mubr.msk.bf16.vlgmr.msra.gmra.mrb[28].mxu1 %vm377_vm2, %v856_v60 }
 0x408   :  { %v843_v2 = vmul.f32 %v1665_v62, %v2119_v22  ;;  %1567 = vmatmul.mubr.msk.bf16.vlgmr.msra.gmra.mrb[32].mxu0 %vm377_vm2, %v857_v61  ;;  %1571 = vmatpush3.bf16.msra.mxu1 %v1141_v1 }
 0x409   :  { %850 = vst.msk [vmem:[#allocation12 + $0x30] sm:$0xff] %vm377_vm2, %v842_v63  ;;  %1577 = vmatpush3.bf16.msra.mxu0 %v1187_v3  ;;  %1572 = vmatprep.mubr.msk.bf16.mxu1 %vm1840_vm0, %v1839_v0  ;;  %v858_v4 = vpack.c.bf16 %v842_v63, %v842_v63 }
 0x40a   :  { %851 = vst.msk [vmem:[#allocation12 + $0x38] sm:$0xff] %vm377_vm2, %v843_v2  ;;  %1578 = vmatprep.mubr.msk.bf16.mxu0 %vm1840_vm0, %v1839_v0  ;;  %1582 = vmatprep.subr.bf16.mxu1 %v1839_v0  ;;  %v859_v5 = vpack.c.bf16 %v843_v2, %v843_v2 }
 0x40f   :  { %1573 = vmatmul.mubr.msk.bf16.vlgmr.msra.gmra.mrb[32].mxu1 %vm377_vm2, %v858_v4 }
 0x410   :  { %1579 = vmatmul.mubr.msk.bf16.vlgmr.msra.gmra.mrb[36].mxu0 %vm377_vm2, %v859_v5  ;;  %1586 = vmatprep.mubr.msk.bf16.mxu1 %vm1840_vm0, %v1839_v0 }
 0x411   :  { %1583 = vmatpush3.bf16.msra.mxu1 %v1632_v20 }
 0x412   :  { %1584 = vmatprep.subr.bf16.mxu1 %v1839_v0 }
 0x415   :  { %1585 = vmatpush3.bf16.msra.mxu1 %v1633_v24 }
 0x448   :  { %v901_v6 = vpop.f32.mrb[20].mxu1 }
 0x449   :  { %v1538_v7 = vpop.f32.mrb[21].mxu1 }
 0x44a   :  { %v904_v8 = vpop.f32.mrb[22].mxu1 }
 0x44b   :  { %v1539_v9 = vpop.f32.mrb[23].mxu1 }
 0x49d   :  { %v947_v10 = vpop.f32.mrb[24].mxu0 }
 0x49e   :  { %v1544_v11 = vpop.f32.mrb[25].mxu0 }
 0x49f   :  { %v950_v12 = vpop.f32.mrb[26].mxu0 }
 0x4a0   :  { %v1545_v13 = vpop.f32.mrb[27].mxu0 }
 0x4a1   :  { %v993_v14 = vpop.f32.mrb[24].mxu1 }
 0x4a2   :  { %v1550_v15 = vpop.f32.mrb[25].mxu1 }
 0x4a3   :  { %v996_v16 = vpop.f32.mrb[26].mxu1 }
 0x4a4   :  { %v1551_v53 = vpop.f32.mrb[27].mxu1 }
 0x4a5   :  { %v1039_v17 = vpop.f32.mrb[28].mxu0 }
 0x4a6   :  { %v1556_v18 = vpop.f32.mrb[29].mxu0 }
 0x4a7   :  { %v1042_v55 = vpop.f32.mrb[30].mxu0 }
 0x4a8   :  { %v1557_v19 = vpop.f32.mrb[31].mxu0 }
 0x4da   :  { %v1085_v21 = vpop.f32.mrb[28].mxu1 }
 0x4db   :  { %v1131_v22 = vpop.f32.mrb[32].mxu0  ;;  %v1562_v23 = vpop.f32.mrb[29].mxu1 }
 0x4dc   :  { %v1608_v25 = vpack.i.bf16 %v1131_v22, %v947_v10  ;;  %v1568_v26 = vpop.f32.mrb[33].mxu0  ;;  %v1088_v27 = vpop.f32.mrb[30].mxu1 }
 0x4dd   :  { %v1134_v28 = vpop.f32.mrb[34].mxu0  ;;  %v1563_v29 = vpop.f32.mrb[31].mxu1 }
 0x4de   :  { %1609 = vrot.lane.b32.xlu0 %v1608_v25, %s1835_s25  ;;  %v1569_v30 = vpop.f32.mrb[35].mxu0 }
 0x4e2   :  { %v1177_v31 = vpop.f32.mrb[32].mxu1 }
 0x4e3   :  { %v1613_v32 = vpack.i.bf16 %v1177_v31, %v993_v14  ;;  %v1223_v33 = vpop.f32.mrb[36].mxu0  ;;  %v1574_v34 = vpop.f32.mrb[33].mxu1 }
 0x4e4   :  { %v1618_v35 = vpack.i.bf16 %v1223_v33, %v1039_v17  ;;  %v1580_v36 = vpop.f32.mrb[37].mxu0  ;;  %v1180_v0 = vpop.f32.mrb[34].mxu1 }
 0x4e5   :  { %v1226_v37 = vpop.f32.mrb[38].mxu0  ;;  %1614 = vrot.lane.b32.xlu1 %v1613_v32, %s1844_s26  ;;  %v1575_v38 = vpop.f32.mrb[35].mxu1 }
 0x4e6   :  { %1619 = vrot.lane.b32.xlu0 %v1618_v35, %s1845_s28  ;;  %v1581_v39 = vpop.f32.mrb[39].mxu0 }
 0x550   :  { %v1610_v40 = vpop.permute.xlu0 %1609 }
 0x551   :  { %v1612_v41 = vunpack.i.h.bf16 %v1610_v40  ;;  %v1611_v42 = vunpack.i.l.bf16 %v1610_v40 }
 0x553   :  { %v1254_v47 = vsel %vm377_vm2, %v1085_v21, %v1612_v41  ;;  %v1253_v48 = vsel %vm377_vm2, %v901_v6, %v1611_v42 }
 0x557   :  { %v1615_v43 = vpop.permute.xlu1 %1614 }
 0x558   :  { %v1617_v44 = vunpack.i.h.bf16 %v1615_v43  ;;  %v1616_v45 = vunpack.i.l.bf16 %v1615_v43  ;;  %v1620_v46 = vpop.permute.xlu0 %1619 }
 0x559   :  { %v1622_v49 = vunpack.i.h.bf16 %v1620_v46  ;;  %v1621_v50 = vunpack.i.l.bf16 %v1620_v46 }
 0x55a   :  { %v1256_v51 = vsel %vm1255_vm4, %v1253_v48, %v1616_v45  ;;  %v1257_v52 = vsel %vm1255_vm4, %v1254_v47, %v1617_v44 }
 0x55b   :  { %v1260_v54 = vsel %vm1258_vm5, %v1257_v52, %v1622_v49  ;;  %v1259_v56 = vsel %vm1258_vm5, %v1256_v51, %v1621_v50 }
 0x55c   :  { %v1261_v57 = vpack.c.bf16 %v1260_v54, %v1259_v56 }
 0x55e   :  { %1587 = vmatmul.mubr.msk.bf16.vlgmr.msra.gmra.mrb[36].mxu1 %vm126_vm1, %v1261_v57 }
 0x55f   :  { %1787 = shalt.err (!%p1784_p2)
}
 0x560   :  { %s1788_s11 = scalar_lea.hbm %s2225_s7, 1024 }
 0x561   :  { %p1789_p3 = scmp.ne.s32.totalorder %s2225_s7, %s1788_s11  ;;  %p1792_p4 = scmp.lt.u32.totalorder %s1788_s11, %s2225_s7 }
 0x563   :  { %p1794_p5 = pnand %p1792_p4, %p1789_p3 }
 0x565   :  { %1797 = shalt.err (!%p1794_p5)
}
 0x566   :  { %1356 = dma.vmem_to_hbm [thread:$0]  %s1351_s0, 1024, %s2225_s7, [#allocation13], %s1834_s1, %s1834_s1, %s1835_s25  }
 0x567   :  { %v1408_v58 = vld [vmem:[%s2223_s5 + $0x3] ss:$0 sm:$0xff]  ;;  %s1847_s9 = smov [#allocation11]  }
 0x568   :  { %s1338_s4 = sshll.u32 %s1847_s9, 4  ;;  %s1339_s4 = int_to_ptr.vmem [resolvable:$true] %s1338_s4 }
 0x569   :  { %s1798_s13 = scalar_lea.vmem %s1339_s4, 256  ;;  %p1803_p7 = scmp.lt.s32.totalorder %s1339_s4, %s1339_s4 }
 0x56a   :  { %p1799_p6 = scmp.ne.s32.totalorder %s1339_s4, %s1798_s13  ;;  %p1804_p8 = scmp.lt.s32.totalorder %s1798_s13, %s1798_s13 }
 0x56c   :  { %p1805_p9 = por %p1804_p8, %p1803_p7 }
 0x56e   :  { %p1806_p10 = pnand %p1805_p9, %p1799_p6 }
 0x631   :  { %v1324_v60 = vpop.f32.mrb[36].mxu1 }
 0x632   :  { %v1325_v59 = vadd.f32 %v1408_v58, %v1324_v60  ;;  %v1588_v61 = vpop.f32.mrb[37].mxu1 }
 0x633   :  { %v1327_v62 = vpop.f32.mrb[38].mxu1 }
 0x634   :  { %1331 = vst.msk [vmem:[#allocation11] sm:$0xff] %vm126_vm1, %v1325_v59  ;;  %v1328_v63 = vadd.f32 %v1408_v58, %v1327_v62  ;;  %v1589_v1 = vpop.f32.mrb[39].mxu1 }
 0x636   :  { %1332 = vst.msk [vmem:[#allocation11 + $0x8] sm:$0xff] %vm126_vm1, %v1328_v63 }
 0x637   :  { %1809 = shalt.err (!%p1806_p10)
}
 0x638   :  { %s1810_s14 = scalar_lea.hbm %s2224_s6, 256 }
 0x639   :  { %p1811_p11 = scmp.ne.s32.totalorder %s2224_s6, %s1810_s14  ;;  %p1814_p12 = scmp.lt.u32.totalorder %s1810_s14, %s2224_s6 }
 0x63b   :  { %p1816_p13 = pnand %p1814_p12, %p1811_p11 }
 0x63d   :  { %1819 = shalt.err (!%p1816_p13)
}
 0x63e   :  { %1344 = dma.vmem_to_hbm [thread:$0]  %s1339_s4, 256, %s2224_s6, [#allocation4], %s1834_s1, %s1834_s1, %s1835_s25  }
 0x63f   :  { %1826 = dma.done.wait [#allocation4], 256  }
 0x640   :  { %1827 = vsyncadd [#allocation4], 4294967040 }
 0x641   :  { %1828 = dma.done.wait [#allocation13], 1024  }
 0x642   :  { %1829 = vsyncadd [#allocation13], 4294966272 }
 0x643   :  { %1363 = vsyncpa [#allocation3], 1 }
 0x644   :  { %1364 = vsyncpa [#allocation6], 1 }
 0x645   :  { %1365 = vsyncpa [#allocation9], 1 }
 0x646   :  { %1366 = vsyncpa [#allocation4], 1 }
 0x647   :  { %1367 = vsyncpa [#allocation13], 1 }

</bundles_post_ra>
